<compile_context>
chip_gen: v7x
topology: tpu7x:2x2x1
jax: 0.10.0
libtpu: 0.0.40
codegen_flags: <defaults>
</compile_context>

<pallas_src>
import math
from functools import partial

import jax
import jax.numpy as jnp
from jax.experimental import pallas as pl
from jax.experimental.pallas import tpu as pltpu


def _round_up(x, m):
    return (x + m - 1) // m * m


def _norm_conv_block_kernel(x_ref, w_ref, o_ref, acc_ref, *, th, wp,
                            activation, pixelnorm, sqrt_c, eps):
    """One (image, row-block, tap-row dy) grid step of the fused block.

    x_ref:   [P_pad, k*Cin]    padded image with width-taps folded into the
                               channel axis, flattened spatially (bf16)
    w_ref:   [k*Cin, Cout_pad] weights of tap-row dy (bf16, Cout zero-padded)
    o_ref:   [tm, Cout_pad]    output row block on the padded-width grid (f32)
    acc_ref: [tm, Cout_pad]    fp32 accumulator, VMEM-resident across dy
    """
    hb = pl.program_id(1)
    dy = pl.program_id(2)
    tm = th * wp

    @pl.when(dy == 0)
    def _init():
        acc_ref[...] = jnp.zeros_like(acc_ref)

    # Row window of the flattened padded image needed by this output row block
    # for tap-row dy.  wp % 8 == 0, so the dynamic start is sublane-aligned and
    # the slice is a view (no relayout copy).  One MXU dot, K = k*Cin.
    base = pl.multiple_of((hb * th + dy) * wp, 8)
    xwin = x_ref[pl.ds(base, tm), :]                       # [tm, k*Cin] bf16
    acc_ref[...] += jnp.dot(xwin, w_ref[...],
                            preferred_element_type=jnp.float32)

    @pl.when(dy == pl.num_programs(2) - 1)
    def _epilogue():
        # WScale is already folded into the weights (conv bias=False).
        y = acc_ref[...]
        if activation:
            y = jnp.where(y > 0.0, y, 0.2 * y)             # LeakyReLU(0.2)
        if pixelnorm:
            # PixelNormLayer: y * sqrt(C) / (||y||_channels + eps).
            # Zero-padded output channels contribute exactly 0 to the norm.
            nrm = jnp.sqrt(jnp.sum(y * y, axis=-1, keepdims=True))
            y = y * (sqrt_c * pl.reciprocal(nrm + eps, approx=True))
        o_ref[...] = y.astype(o_ref.dtype)


def norm_conv_block(x_nchw, weight_oihw, *, stride=1, padding=1,
                    pixelnorm=True, activation=True, block_rows=512,
                    eps=1e-8):
    """Fused NormConvBlock forward.

    x_nchw:      [N, Cin, H, W]     input (NCHW, like the PyTorch module)
    weight_oihw: [Cout, Cin, k, k]  raw (pre-WScale) conv weight, bias=False
    Returns      [N, Cout, Hout, Wout] float32.
    """
    if stride != 1:
        # TODO(synk): stride > 1 (allowed by the module signature, unused by
        # the GAN generator) is not implemented in this flattened formulation.
        raise NotImplementedError("stride > 1 not supported")

    n, cin, h, w = x_nchw.shape
    cout, cin_w, kh, kw = weight_oihw.shape
    assert cin_w == cin and kh == kw
    k = kh
    hout = h + 2 * padding - k + 1
    wout = w + 2 * padding - k + 1
    assert hout > 0 and wout > 0

    # --- weights: WScaleLayer stores w/scale and multiplies the conv output
    # by scale, so the forward is exactly conv(x, w_raw); use w_raw directly.
    w32 = weight_oihw.astype(jnp.float32)
    cout_pad = _round_up(cout, 128)                        # lane-dense stores
    w_hwio = jnp.transpose(w32, (2, 3, 1, 0))              # [k, k, Cin, Cout]
    w_all = w_hwio.reshape(k, k * cin, cout)               # [dy, dx*Cin+c, o]
    w_all = jnp.pad(w_all, ((0, 0), (0, 0), (0, cout_pad - cout)))
    w_all = w_all.astype(jnp.bfloat16)                     # bf16 into the MXU

    # --- activations: NHWC, zero-padded spatially, width rounded to a sublane
    # multiple, width-taps (dx) folded into the channel axis, then flattened
    # to [P, k*Cin].  dy stays a grid reduction axis, so HBM holds only a
    # k*Cin-channel image instead of a full k*k*Cin im2col tensor.
    wp = _round_up(w + 2 * padding, 8)
    hp = h + 2 * padding
    x = jnp.transpose(x_nchw, (0, 2, 3, 1)).astype(jnp.bfloat16)     # NHWC
    x = jnp.pad(x, ((0, 0), (padding, padding),
                    (padding, wp - w - padding), (0, 0)))            # [n,hp,wp,cin]
    if k > 1:
        taps = [x] + [jnp.pad(x[:, :, dx:, :],
                              ((0, 0), (0, 0), (0, dx), (0, 0)))
                      for dx in range(1, k)]
        xcat = jnp.concatenate(taps, axis=-1)              # [n, hp, wp, k*cin]
    else:
        xcat = x
    kcin = k * cin
    x2d = xcat.reshape(n, hp * wp, kcin)

    # --- output row-block tiling (tm = th * wp rows of the padded-width grid)
    th = max(1, min(hout, block_rows // wp))
    num_hb = pl.cdiv(hout, th)
    tm = th * wp
    p_need = (num_hb * th + k - 1) * wp                    # rows touched max
    x2d = jnp.pad(x2d, ((0, 0), (0, max(0, p_need - hp * wp)), (0, 0)))
    p_pad = x2d.shape[1]

    kern = partial(_norm_conv_block_kernel, th=th, wp=wp,
                   activation=activation, pixelnorm=pixelnorm,
                   sqrt_c=float(math.sqrt(cout)), eps=float(eps))

    cost = pl.CostEstimate(
        flops=2 * n * hout * wout * cout * cin * k * k,
        transcendentals=(2 * n * hout * wout) if pixelnorm else 0,
        bytes_accessed=x2d.size * 2 + w_all.size * 2
                       + n * num_hb * tm * cout_pad * 4)

    out = pl.pallas_call(
        kern,
        out_shape=jax.ShapeDtypeStruct((n, num_hb * tm, cout_pad), jnp.float32),
        grid_spec=pltpu.PrefetchScalarGridSpec(
            num_scalar_prefetch=0,
            grid=(n, num_hb, k),                           # reduction (dy) last
            in_specs=[
                pl.BlockSpec((None, p_pad, kcin),
                             lambda ni, hb, dy: (ni, 0, 0)),
                pl.BlockSpec((None, kcin, cout_pad),
                             lambda ni, hb, dy: (dy, 0, 0)),
            ],
            out_specs=pl.BlockSpec((None, tm, cout_pad),
                                   lambda ni, hb, dy: (ni, hb, 0)),
            scratch_shapes=[pltpu.VMEM((tm, cout_pad), jnp.float32)],
        ),
        compiler_params=pltpu.CompilerParams(
            dimension_semantics=("parallel", "parallel", "arbitrary"),
            vmem_limit_bytes=32 * 1024 * 1024),            # safe on v7x 64 MiB
        cost_estimate=cost,
    )(x2d, w_all)

    out = out.reshape(n, num_hb * th, wp, cout_pad)[:, :hout, :wout, :cout]
    return jnp.transpose(out, (0, 3, 1, 2))                # -> NCHW


def _reference(x_nchw, weight_oihw, *, stride, padding, pixelnorm, activation,
               eps=1e-8):
    """Pure-JAX fp32 reference matching the PyTorch NormConvBlock forward."""
    w32 = weight_oihw.astype(jnp.float32)
    scale = jnp.sqrt(jnp.mean(w32 * w32))
    w_stored = w32 / scale                                 # WScaleLayer init
    y = jax.lax.conv_general_dilated(
        x_nchw.astype(jnp.float32), w_stored,
        window_strides=(stride, stride),
        padding=[(padding, padding), (padding, padding)],
        dimension_numbers=("NCHW", "OIHW", "NCHW"))
    y = scale * y                                          # WScaleLayer fwd
    if activation:
        y = jnp.where(y > 0, y, 0.2 * y)
    if pixelnorm:
        c = y.shape[1]
        nrm = jnp.sqrt(jnp.sum(y * y, axis=1, keepdims=True))
        y = y * (math.sqrt(c) / (nrm + eps))
    return y


if __name__ == "__main__":
    key = jax.random.PRNGKey(0)
    kx1, kw1, kx2, kw2 = jax.random.split(key, 4)

    # --- config 1: standard 3x3 NormConvBlock (act + pixelnorm), small shapes.
    # block_rows=128 is deliberately small so the row pipeline (num_hb > 1 and
    # the padded-tail path) is exercised even at toy sizes.
    N, CIN, H, W, COUT = 2, 4, 16, 16, 32
    x1 = jax.random.normal(kx1, (N, CIN, H, W), jnp.float32)
    w1 = 0.1 * jax.random.normal(kw1, (COUT, CIN, 3, 3), jnp.float32)

    run1 = jax.jit(lambda a, b: norm_conv_block(
        a, b, stride=1, padding=1, pixelnorm=True, activation=True,
        block_rows=128))
    out1 = jax.block_until_ready(run1(x1, w1))
    ref1 = jax.block_until_ready(_reference(
        x1, w1, stride=1, padding=1, pixelnorm=True, activation=True))
    assert out1.shape == (N, COUT, H, W), out1.shape
    assert bool(jnp.all(jnp.isfinite(out1)))
    err1 = float(jnp.max(jnp.abs(out1 - ref1)))
    tol1 = 5e-2 * (float(jnp.max(jnp.abs(ref1))) + 1e-3)
    assert err1 <= tol1, (err1, tol1)

    # --- config 2: 1x1 conv, no activation / no pixelnorm (toRGB-style usage).
    x2 = jax.random.normal(kx2, (N, 8, 16, 16), jnp.float32)
    w2 = 0.1 * jax.random.normal(kw2, (3, 8, 1, 1), jnp.float32)
    run2 = jax.jit(lambda a, b: norm_conv_block(
        a, b, stride=1, padding=0, pixelnorm=False, activation=False))
    out2 = jax.block_until_ready(run2(x2, w2))
    ref2 = _reference(x2, w2, stride=1, padding=0,
                      pixelnorm=False, activation=False)
    assert out2.shape == (N, 3, 16, 16), out2.shape
    assert bool(jnp.all(jnp.isfinite(out2)))
    err2 = float(jnp.max(jnp.abs(out2 - ref2)))
    tol2 = 5e-2 * (float(jnp.max(jnp.abs(ref2))) + 1e-3)
    assert err2 <= tol2, (err2, tol2)

    print("KERNEL_OK")
</pallas_src>

<mosaic_0001>
module attributes {stable_mosaic.version = 11 : i64} {
  func.func @_norm_conv_block_kernel(%arg0: i32, %arg1: i32, %arg2: i32, %arg3: memref<1x528x12xbf16, #tpu.memory_space<vmem>>, %arg4: memref<1x12x128xbf16, #tpu.memory_space<vmem>>, %arg5: memref<1x120x128xf32, #tpu.memory_space<vmem>>, %arg6: memref<120x128xf32, #tpu.memory_space<vmem>>) attributes {dimension_semantics = [#tpu.dimension_semantics<parallel>, #tpu.dimension_semantics<parallel>, #tpu.dimension_semantics<arbitrary>], iteration_bounds = array<i64: 2, 4, 3>, scalar_prefetch = 0 : i64, scratch_operands = 1 : i64, tpu.core_type = #tpu.core_type<tc>, window_params = [{transform_indices = @transform_0, window_bounds = array<i64: 1, 528, 12>}, {transform_indices = @transform_1, window_bounds = array<i64: 1, 12, 128>}, {transform_indices = @transform_2, window_bounds = array<i64: 1, 120, 128>}]} {
    %c0_i32 = arith.constant 0 : i32
    %0 = arith.cmpi eq, %arg2, %c0_i32 : i32
    %1 = arith.extui %0 : i1 to i32
    %c0_i32_0 = arith.constant 0 : i32
    %2 = arith.cmpi ne, %1, %c0_i32_0 : i32
    scf.if %2 {
      %cst_10 = arith.constant 0.000000e+00 : f32
      %19 = vector.broadcast %cst_10 : f32 to vector<120x128xf32>
      %c0_11 = arith.constant 0 : index
      %c0_12 = arith.constant 0 : index
      %20 = vector.load %arg6[%c0_11, %c0_12] : memref<120x128xf32, #tpu.memory_space<vmem>>, vector<120x128xf32>
      tpu.vector_store %arg6[%c0_11, %c0_12], %19 {strides = array<i32>} : memref<120x128xf32, #tpu.memory_space<vmem>>, vector<120x128xf32>,
    } else {
    }
    %c5_i32 = arith.constant 5 : i32
    %3 = arith.muli %arg1, %c5_i32 : i32
    %4 = arith.addi %3, %arg2 : i32
    %c24_i32 = arith.constant 24 : i32
    %5 = arith.muli %4, %c24_i32 : i32
    %6 = tpu.assume_multiple %5, 8 : i32
    %c0 = arith.constant 0 : index
    %7 = arith.index_cast %6 : i32 to index
    %c0_1 = arith.constant 0 : index
    %8 = vector.load %arg3[%c0, %7, %c0_1] : memref<1x528x12xbf16, #tpu.memory_space<vmem>>, vector<1x120x12xbf16>
    %9 = vector.shape_cast %8 : vector<1x120x12xbf16> to vector<120x12xbf16>
    %c0_2 = arith.constant 0 : index
    %c0_3 = arith.constant 0 : index
    %10 = vector.load %arg6[%c0_2, %c0_3] : memref<120x128xf32, #tpu.memory_space<vmem>>, vector<120x128xf32>
    %c0_4 = arith.constant 0 : index
    %c0_5 = arith.constant 0 : index
    %c0_6 = arith.constant 0 : index
    %11 = vector.load %arg4[%c0_4, %c0_5, %c0_6] : memref<1x12x128xbf16, #tpu.memory_space<vmem>>, vector<1x12x128xbf16>
    %12 = vector.shape_cast %11 : vector<1x12x128xbf16> to vector<12x128xbf16>
    %cst = arith.constant dense<0.000000e+00> : vector<120x128xf32>
    %13 = tpu.matmul %9, %12, %cst {dimension_numbers = #tpu.dot_dimension_numbers<[1], [0], [0], [1], [0, 0, 1, 1], [], []>} : vector<120x12xbf16>, vector<12x128xbf16>, vector<120x128xf32> -> vector<120x128xf32>
    %14 = arith.addf %10, %13 : vector<120x128xf32>
    %c0_7 = arith.constant 0 : index
    %c0_8 = arith.constant 0 : index
    %15 = vector.load %arg6[%c0_7, %c0_8] : memref<120x128xf32, #tpu.memory_space<vmem>>, vector<120x128xf32>
    tpu.vector_store %arg6[%c0_7, %c0_8], %14 {strides = array<i32>} : memref<120x128xf32, #tpu.memory_space<vmem>>, vector<120x128xf32>,
    %c2_i32 = arith.constant 2 : i32
    %16 = arith.cmpi eq, %arg2, %c2_i32 : i32
    %17 = arith.extui %16 : i1 to i32
    %c0_i32_9 = arith.constant 0 : i32
    %18 = arith.cmpi ne, %17, %c0_i32_9 : i32
    scf.if %18 {
      %c0_10 = arith.constant 0 : index
      %c0_11 = arith.constant 0 : index
      %19 = vector.load %arg6[%c0_10, %c0_11] : memref<120x128xf32, #tpu.memory_space<vmem>>, vector<120x128xf32>
      %cst_12 = arith.constant 0.000000e+00 : f32
      %20 = vector.broadcast %cst_12 : f32 to vector<120x128xf32>
      %21 = arith.cmpf ogt, %19, %20 : vector<120x128xf32>
      %cst_13 = arith.constant 2.000000e-01 : f32
      %22 = vector.broadcast %cst_13 : f32 to vector<120x128xf32>
      %23 = arith.mulf %22, %19 : vector<120x128xf32>
      %24 = arith.select %21, %19, %23 : vector<120x128xi1>, vector<120x128xf32>
      %25 = arith.mulf %24, %24 : vector<120x128xf32>
      %cst_14 = arith.constant dense<0.000000e+00> : vector<120xf32>
      %26 = vector.multi_reduction <add>, %25, %cst_14 [1] : vector<120x128xf32> to vector<120xf32>
      %27 = vector.shape_cast %26 : vector<120xf32> to vector<120x1xf32>
      %28 = math.sqrt %27 : vector<120x1xf32>
      %cst_15 = arith.constant 9.99999993E-9 : f32
      %29 = vector.broadcast %cst_15 : f32 to vector<120x1xf32>
      %30 = arith.addf %28, %29 : vector<120x1xf32>
      %31 = tpu.reciprocal %30 {approx = true} : vector<120x1xf32> -> vector<120x1xf32>
      %cst_16 = arith.constant 5.65685415 : f32
      %32 = vector.broadcast %cst_16 : f32 to vector<120x1xf32>
      %33 = arith.mulf %32, %31 : vector<120x1xf32>
      %34 = vector.broadcast %33 : vector<120x1xf32> to vector<120x128xf32>
      %35 = arith.mulf %24, %34 : vector<120x128xf32>
      %c0_17 = arith.constant 0 : index
      %c0_18 = arith.constant 0 : index
      %c0_19 = arith.constant 0 : index
      %36 = vector.load %arg5[%c0_17, %c0_18, %c0_19] : memref<1x120x128xf32, #tpu.memory_space<vmem>>, vector<1x120x128xf32>
      %37 = vector.shape_cast %36 : vector<1x120x128xf32> to vector<120x128xf32>
      %38 = vector.shape_cast %35 : vector<120x128xf32> to vector<1x120x128xf32>
      tpu.vector_store %arg5[%c0_17, %c0_18, %c0_19], %38 {strides = array<i32>} : memref<1x120x128xf32, #tpu.memory_space<vmem>>, vector<1x120x128xf32>,
    } else {
    }
    return
  }
  func.func @transform_0(%arg0: i32, %arg1: i32, %arg2: i32) -> (i32, i32, i32) {
    %c0_i32 = arith.constant 0 : i32
    %c0_i32_0 = arith.constant 0 : i32
    %c0_i32_1 = arith.constant 0 : i32
    return %arg0, %c0_i32, %c0_i32_0 : i32, i32, i32
  }
  func.func @transform_1(%arg0: i32, %arg1: i32, %arg2: i32) -> (i32, i32, i32) {
    %c0_i32 = arith.constant 0 : i32
    %c0_i32_0 = arith.constant 0 : i32
    %c0_i32_1 = arith.constant 0 : i32
    return %arg2, %c0_i32, %c0_i32_0 : i32, i32, i32
  }
  func.func @transform_2(%arg0: i32, %arg1: i32, %arg2: i32) -> (i32, i32, i32) {
    %c0_i32 = arith.constant 0 : i32
    %c0_i32_0 = arith.constant 0 : i32
    return %arg0, %arg1, %c0_i32 : i32, i32, i32
  }
}

</mosaic_0001>

<bundles_post_ra>
// kernel: _lambda_.1
= control target key start
LH: loop header
LB: loop body
LE: loop exit
PB: predicated region body
PF: predicated region fallthrough
CT: control target
= control target key end

     0   :  { %s1107_s9 = smov 0   ;;  %s1109_s10 = smov 0   ;;  %s1397_s0 = inlined_call_operand.vmem [shape: bf16[2,528,12], index: 0, kind: input, shape index: {}]   ;;  %s1398_s1 = inlined_call_operand.vmem [shape: bf16[3,12,128], index: 1, kind: input, shape index: {}]   ;;  %s1399_s2 = inlined_call_operand.vmem [shape: f32[2,480,128], index: 2, kind: output, shape index: {}]  }
   0x1   :  { %s1111_s11 = smov 0   ;;  %s1113_s12 = smov 0  }
   0x2   :  { %s1115_s13 = smov 0   ;;  %s1117_s14 = smov 0  }
   0x3   :  { %s1119_s15 = smov 0  }
   0x4 LB: > { %s24_s16 = sadd.s32 1, %s1077_s12  ;;  %s27_s17 = sadd.s32 1, %s1081_s13  ;;  %s1089_s15 = sphi %s1119_s15, %s12_s15   ;;  %s1085_s14 = sphi %s1117_s14, %s1405_s14   ;;  %s1081_s13 = sphi %s1115_s13, %s1404_s13   ;;  %s1077_s12 = sphi %s1113_s12, %s1403_s12   ;;  %s1073_s11 = sphi %s1111_s11, %s1402_s11   ;;  %s1069_s10 = sphi %s1109_s10, %s1401_s10   ;;  %s1065_s9 = sphi %s1107_s9, %s1400_s9  }
   0x5   : > { %p25_p0 = scmp.ge.s32.totalorder %s24_s16, 3  ;;  %p848_p1 = scmp.ge.s32.totalorder %s1089_s15, 1 }
   0x6   : > { %p143_p2 = scmp.lt.s32.totalorder %s1089_s15, 25  ;;  %s31_s18 = sadd.s32 1, %s1085_s14 }
   0x7   : > { %s1407_s16 = smov (%p25_p0, %s24_s16), 0  ;;  %s1409_s17 = smov (!%p25_p0, %s27_s17), %s1081_s13 }
   0x8   : > { %p144_p3 = pnand %p848_p1, %p143_p2  ;;  %p29_p4 = scmp.ge.s32.totalorder %s1409_s17, 4 }
   0x9   : > { %p174_p6 = scmp.lt.s32.totalorder (!%p144_p3), %s1073_s11, 1  ;;  %p179_p7 = scmp.lt.s32.totalorder (!%p144_p3), %s1065_s9, 2 }
   0xa   : > { %s1411_s17 = smov (%p29_p4, %s1409_s17), 0  ;;  %s1413_s18 = smov (!%p29_p4, %s31_s18), %s1085_s14 }
   0xb   : > { %p33_p5 = scmp.ge.s32.totalorder %s1413_s18, 2  ;;  %147 = sbr.rel (%p144_p3) target bundleno = 477 (0x1dd), region = 28 }
   0xc   : > { %s184_s19 = smul.u32 (!%p144_p3), 15, %s1069_s10  ;;  %p853_p9 = scmp.ne.s32.totalorder (!%p144_p3), %s1065_s9, 0 }
   0xd   : > { %s1415_s18 = smov (%p33_p5, %s1413_s18), 0 }
   0xe   : > { %p187_p8 = scmp.lt.s32.totalorder (!%p144_p3), %s184_s19, 59 }
  0x12   : > { %s1417_s11 = smov (!%p174_p6, %s1073_s11), 1  ;;  %s1419_s19 = smov (!%p187_p8, %s184_s19), 59 }
  0x13   : > { %s180_s20 = scalar_select %p179_p7, %s1065_s9, 2 }
  0x14   : > { %s907_s21 = smul.u32 264, %s1417_s11  ;;  %v1091_v0 = vmov (!%p853_p9), 0.0  }
  0x15   : > { %s875_s22 = sshll.u32 %s180_s20, 3  ;;  %s908_s23 = smul.u32 60, %s1417_s11  ;;  %199 = vst [vmem:[#allocation2] sm:$0xff] (!%p853_p9), %v1091_v0  ;;  %200 = vst [vmem:[#allocation2 + $0x8] sm:$0xff] (!%p853_p9), %v1091_v0 }
  0x16   : > { %s1159_s26 = scalar_lea.vmem %s1397_s0, %s907_s21  ;;  %s183_s29 = scalar_lea.vmem %s1398_s1, %s875_s22  ;;  %201 = vst [vmem:[#allocation2 + $0x10] sm:$0xff] (!%p853_p9), %v1091_v0  ;;  %202 = vst [vmem:[#allocation2 + $0x18] sm:$0xff] (!%p853_p9), %v1091_v0 }
  0x17   : > { %s190_s30 = sadd.s32 %s908_s23, %s1419_s19  ;;  %198 = sbr.rel (%p853_p9) target bundleno = 30 (0x1e), region = 32  ;;  %203 = vst [vmem:[#allocation2 + $0x20] sm:$0xff] (!%p853_p9), %v1091_v0  ;;  %204 = vst [vmem:[#allocation2 + $0x28] sm:$0xff] (!%p853_p9), %v1091_v0 }
  0x18   : > { %s852_s3 = sshll.u32 %s190_s30, 3  ;;  %205 = vst [vmem:[#allocation2 + $0x30] sm:$0xff] (!%p853_p9), %v1091_v0  ;;  %206 = vst [vmem:[#allocation2 + $0x38] sm:$0xff] (!%p853_p9), %v1091_v0 }
  0x19   : > { %s1167_s6 = scalar_lea.vmem %s1399_s2, %s852_s3  ;;  %207 = vst [vmem:[#allocation2 + $0x40] sm:$0xff] (!%p853_p9), %v1091_v0  ;;  %208 = vst [vmem:[#allocation2 + $0x48] sm:$0xff] (!%p853_p9), %v1091_v0 }
  0x1a   : > { %209 = vst [vmem:[#allocation2 + $0x50] sm:$0xff] (!%p853_p9), %v1091_v0  ;;  %210 = vst [vmem:[#allocation2 + $0x58] sm:$0xff] (!%p853_p9), %v1091_v0 }
  0x1b   : > { %211 = vst [vmem:[#allocation2 + $0x60] sm:$0xff] (!%p853_p9), %v1091_v0  ;;  %212 = vst [vmem:[#allocation2 + $0x68] sm:$0xff] (!%p853_p9), %v1091_v0 }
  0x1c   : > { %213 = vst [vmem:[#allocation2 + $0x70] sm:$0xff] (!%p853_p9), %v1091_v0 }
  0x1e PF: > { %v966_v1 = vld [vmem:[%s183_s29] sm:$0x3f]   ;;  %vm321_vm0 = vcmask 1045504   ;;  %s214_s7 = smul.u32 5, %s1069_s10  ;;  %vm296_vm1 = vcmask 97280   ;;  %v238_v11 = vld [vmem:[#allocation2 + $0x10] sm:$0xff] }
  0x1f   : > { %905 = vmatprep.subr.msk.bf16.mxu0 %vm321_vm0, %v966_v1  ;;  %906 = vmatprep.subr.msk.bf16.mxu1 %vm321_vm0, %v966_v1  ;;  %v323_v2 = vsel %vm321_vm0, %v966_v1, 0  ;;  %v236_v13 = vld [vmem:[#allocation2] sm:$0xff]  ;;  %v239_v16 = vld [vmem:[#allocation2 + $0x18] sm:$0xff]  ;;  %v237_v21 = vld [vmem:[#allocation2 + $0x8] sm:$0xff]  ;;  %p872_p10 = scmp.ne.s32.totalorder %s1065_s9, 2 }
  0x20   : > { %886 = vmatpush3.bf16.msra.mxu0 %v323_v2  ;;  %904 = vmatpush3.bf16.msra.mxu1 %v323_v2  ;;  %s215_s8 = sadd.s32 %s1065_s9, %s214_s7  ;;  %v244_v15 = vld [vmem:[#allocation2 + $0x40] sm:$0xff]  ;;  %v245_v26 = vld [vmem:[#allocation2 + $0x48] sm:$0xff]  ;;  %v242_v35 = vld [vmem:[#allocation2 + $0x30] sm:$0xff] }
  0x21   : > { %s216_s11 = smul.u32 24, %s215_s8  ;;  %v246_v12 = vld [vmem:[#allocation2 + $0x50] sm:$0xff]  ;;  %v247_v20 = vld [vmem:[#allocation2 + $0x58] sm:$0xff]  ;;  %v240_v37 = vld [vmem:[#allocation2 + $0x20] sm:$0xff] }
  0x22   : > { %v248_v39 = vld [vmem:[#allocation2 + $0x60] sm:$0xff]  ;;  %v243_v40 = vld [vmem:[#allocation2 + $0x38] sm:$0xff]  ;;  %v241_v44 = vld [vmem:[#allocation2 + $0x28] sm:$0xff] }
  0x23   : > { %s217_s19 = sshra.s32 %s216_s11, 3  ;;  %v250_v36 = vld [vmem:[#allocation2 + $0x70] sm:$0xff]  ;;  %v249_v49 = vld [vmem:[#allocation2 + $0x68] sm:$0xff] }
  0x24   : > { %s854_s20 = sshll.u32 %s217_s19, 2 }
  0x25   : > { %s220_s21 = scalar_lea.vmem %s1159_s26, %s854_s20 }
  0x26   : > { %v967_v3 = vld [vmem:[%s220_s21] sm:$0xff]   ;;  %v969_v5 = vld [vmem:[%s220_s21 + $0x8] sm:$0xff]   ;;  %v971_v7 = vld [vmem:[%s220_s21 + $0x10] sm:$0xff]  }
  0x27   : > { %v968_v4 = vld [vmem:[%s220_s21 + $0x20] sm:$0xff]   ;;  %887 = vmatprep.mubr.msk.bf16.mxu0 %vm296_vm1, %v967_v3  ;;  %v970_v6 = vld [vmem:[%s220_s21 + $0x28] sm:$0xff]   ;;  %v972_v8 = vld [vmem:[%s220_s21 + $0x30] sm:$0xff]  }
  0x28   : > { %895 = vmatprep.mubr.msk.bf16.mxu1 %vm296_vm1, %v968_v4  ;;  %888 = vmatmul.mubr.msk.bf16.vlgmr.msra.gmra.mrb[0].mxu0 %vm296_vm1, %v969_v5  ;;  %v973_v9 = vld [vmem:[%s220_s21 + $0x18] sm:$0xff]  }
  0x29   : > { %896 = vmatmul.mubr.msk.bf16.vlgmr.msra.gmra.mrb[0].mxu1 %vm296_vm1, %v970_v6  ;;  %891 = vmatprep.mubr.msk.bf16.mxu0 %vm296_vm1, %v971_v7  ;;  %v974_v10 = vld [vmem:[%s220_s21 + $0x38] ss:$0 sps:$4 sm:$0xff]  }
  0x2a   : > { %899 = vmatprep.mubr.msk.bf16.mxu1 %vm296_vm1, %v972_v8 }
  0x30   : > { %892 = vmatmul.mubr.msk.bf16.gmra.mrb[4].mxu0 %vm296_vm1, %v973_v9 }
  0x31   : > { %900 = vmatmul.mubr.msk.bf16.gmra.mrb[4].mxu1 %vm296_vm1, %v974_v10 }
  0xfb   : > { %v889_v14 = vpop.f32.mrb[0].mxu0 }
  0xfc   : > { %v423_v17 = vadd.f32 %v889_v14, %v238_v11  ;;  %v897_v18 = vpop.f32.mrb[0].mxu1  ;;  %v359_v19 = vpop.f32.mrb[1].mxu0 }
  0xfd   : > { %v431_v22 = vadd.f32 %v897_v18, %v246_v12  ;;  %v421_v23 = vadd.f32 %v359_v19, %v236_v13  ;;  %v391_v24 = vpop.f32.mrb[1].mxu1  ;;  %v890_v25 = vpop.f32.mrb[2].mxu0 }
  0xfe   : > { %438 = vst [vmem:[#allocation2 + $0x10] sm:$0xff] %v423_v17  ;;  %v429_v27 = vadd.f32 %v391_v24, %v244_v15  ;;  %v424_v28 = vadd.f32 %v890_v25, %v239_v16  ;;  %v898_v29 = vpop.f32.mrb[2].mxu1  ;;  %v362_v30 = vpop.f32.mrb[3].mxu0 }
  0xff   : > { %446 = vst [vmem:[#allocation2 + $0x50] sm:$0xff] %v431_v22  ;;  %436 = vst [vmem:[#allocation2] sm:$0xff] %v421_v23  ;;  %v432_v31 = vadd.f32 %v898_v29, %v247_v20  ;;  %v422_v32 = vadd.f32 %v362_v30, %v237_v21  ;;  %v394_v33 = vpop.f32.mrb[3].mxu1 }
 0x100   : > { %444 = vst [vmem:[#allocation2 + $0x40] sm:$0xff] %v429_v27  ;;  %439 = vst [vmem:[#allocation2 + $0x18] sm:$0xff] %v424_v28  ;;  %v430_v34 = vadd.f32 %v394_v33, %v245_v26 }
 0x101   : > { %447 = vst [vmem:[#allocation2 + $0x58] sm:$0xff] %v432_v31  ;;  %437 = vst [vmem:[#allocation2 + $0x8] sm:$0xff] %v422_v32 }
 0x102   : > { %445 = vst [vmem:[#allocation2 + $0x48] sm:$0xff] %v430_v34 }
 0x103   : > { %v893_v38 = vpop.f32.mrb[4].mxu0 }
 0x104   : > { %v427_v41 = vadd.f32 %v893_v38, %v242_v35  ;;  %v901_v42 = vpop.f32.mrb[4].mxu1  ;;  %v375_v43 = vpop.f32.mrb[5].mxu0  ;;  %454 = sbr.rel (%p872_p10) target bundleno = 477 (0x1dd), region = 36 }
 0x105   : > { %v435_v45 = vadd.f32 %v901_v42, %v250_v36  ;;  %v425_v46 = vadd.f32 %v375_v43, %v240_v37  ;;  %v407_v47 = vpop.f32.mrb[5].mxu1  ;;  %v894_v48 = vpop.f32.mrb[6].mxu0  ;;  %v457_v57 = vld [vmem:[#allocation2 + $0x10] sm:$0xff] (!%p872_p10) }
 0x106   : > { %442 = vst [vmem:[#allocation2 + $0x30] sm:$0xff] %v427_v41  ;;  %v433_v50 = vadd.f32 %v407_v47, %v248_v39  ;;  %v428_v51 = vadd.f32 %v894_v48, %v243_v40  ;;  %v902_v52 = vpop.f32.mrb[6].mxu1  ;;  %v378_v53 = vpop.f32.mrb[7].mxu0  ;;  %v455_v58 = vld [vmem:[#allocation2] sm:$0xff] (!%p872_p10)  ;;  %vm472_vm2 = vcmp.gt.f32.partialorder (!%p872_p10), %v457_v57, 0.0  ;;  %v465_v28 = vld [vmem:[#allocation2 + $0x50] sm:$0xff] (!%p872_p10) }
 0x107   : > { %450 = vst [vmem:[#allocation2 + $0x70] sm:$0xff] %v435_v45  ;;  %440 = vst [vmem:[#allocation2 + $0x20] sm:$0xff] %v425_v46  ;;  %v426_v54 = vadd.f32 %v378_v53, %v241_v44  ;;  %v410_v55 = vpop.f32.mrb[7].mxu1  ;;  %v458_v59 = vld [vmem:[#allocation2 + $0x18] sm:$0xff] (!%p872_p10)  ;;  %v487_v60 = vmul.f32 (!%p872_p10), 0.2, %v457_v57 }
 0x108   : > { %448 = vst [vmem:[#allocation2 + $0x60] sm:$0xff] %v433_v50  ;;  %443 = vst [vmem:[#allocation2 + $0x38] sm:$0xff] %v428_v51  ;;  %v434_v56 = vadd.f32 %v410_v55, %v249_v49  ;;  %vm470_vm3 = vcmp.gt.f32.partialorder (!%p872_p10), %v455_v58, 0.0  ;;  %v485_v61 = vmul.f32 (!%p872_p10), 0.2, %v455_v58  ;;  %vm473_vm4 = vcmp.gt.f32.partialorder (!%p872_p10), %v458_v59, 0.0 }
 0x109   : > { %441 = vst [vmem:[#allocation2 + $0x28] sm:$0xff] %v426_v54  ;;  %v488_v62 = vmul.f32 (!%p872_p10), 0.2, %v458_v59  ;;  %v456_v63 = vld [vmem:[#allocation2 + $0x8] sm:$0xff] (!%p872_p10)  ;;  %v1182_v2 = vsel (!%p872_p10), %vm472_vm2, %v457_v57, %v487_v60  ;;  %v463_v20 = vld [vmem:[#allocation2 + $0x40] sm:$0xff] (!%p872_p10)  ;;  %v466_v27 = vld [vmem:[#allocation2 + $0x58] sm:$0xff] (!%p872_p10) }
 0x10a   : > { %449 = vst [vmem:[#allocation2 + $0x68] sm:$0xff] %v434_v56  ;;  %v1184_v3 = vsel (!%p872_p10), %vm470_vm3, %v455_v58, %v485_v61  ;;  %vm471_vm5 = vcmp.gt.f32.partialorder (!%p872_p10), %v456_v63, 0.0  ;;  %v486_v4 = vmul.f32 (!%p872_p10), 0.2, %v456_v63  ;;  %v517_v5 = vmul.f32 (!%p872_p10), %v1182_v2, %v1182_v2  ;;  %v464_v19 = vld [vmem:[#allocation2 + $0x48] sm:$0xff] (!%p872_p10) }
 0x10b   : > { %v515_v6 = vmul.f32 %v1184_v3, %v1184_v3  ;;  %v1190_v7 = vsel %vm473_vm4, %v458_v59, %v488_v62  ;;  %v494_v25 = vmul.f32 0.2, %v464_v19  ;;  %v493_v26 = vmul.f32 0.2, %v463_v20 }
 0x10c   : > { %v1192_v10 = vsel %vm471_vm5, %v456_v63, %v486_v4  ;;  %534 = vadd.xlane.f32.xlu1 %v517_v5  ;;  %v518_v12 = vmul.f32 %v1190_v7, %v1190_v7  ;;  %vm479_vm10 = vcmp.gt.f32.partialorder %v464_v19, 0.0  ;;  %vm478_vm11 = vcmp.gt.f32.partialorder %v463_v20, 0.0 }
 0x10d   : > { %v461_v9 = vld [vmem:[#allocation2 + $0x30] sm:$0xff]  ;;  %530 = vadd.xlane.f32.xlu0 %v515_v6  ;;  %v516_v13 = vmul.f32 %v1192_v10, %v1192_v10  ;;  %v1214_v31 = vsel %vm479_vm10, %v464_v19, %v494_v25  ;;  %v1216_v32 = vsel %vm478_vm11, %v463_v20, %v493_v26  ;;  %v496_v33 = vmul.f32 0.2, %v466_v27 }
 0x10e   : > { %v459_v1 = vld [vmem:[#allocation2 + $0x20] sm:$0xff]  ;;  %v491_v17 = vmul.f32 0.2, %v461_v9  ;;  %vm476_vm9 = vcmp.gt.f32.partialorder %v461_v9, 0.0  ;;  %v495_v34 = vmul.f32 0.2, %v465_v28  ;;  %v524_v37 = vmul.f32 %v1214_v31, %v1214_v31 }
 0x10f   : > { %v462_v8 = vld [vmem:[#allocation2 + $0x38] sm:$0xff]  ;;  %vm474_vm7 = vcmp.gt.f32.partialorder %v459_v1, 0.0  ;;  %v489_v14 = vmul.f32 0.2, %v459_v1  ;;  %vm481_vm12 = vcmp.gt.f32.partialorder %v466_v27, 0.0  ;;  %vm480_vm13 = vcmp.gt.f32.partialorder %v465_v28, 0.0 }
 0x110   : > { %v460_v0 = vld [vmem:[#allocation2 + $0x28] sm:$0xff]  ;;  %v492_v16 = vmul.f32 0.2, %v462_v8  ;;  %vm477_vm8 = vcmp.gt.f32.partialorder %v462_v8, 0.0  ;;  %536 = vadd.xlane.f32.xlu1 %v518_v12  ;;  %v1208_v24 = vsel %vm476_vm9, %v461_v9, %v491_v17  ;;  %v467_v36 = vld [vmem:[#allocation2 + $0x60] sm:$0xff]  ;;  %v523_v38 = vmul.f32 %v1216_v32, %v1216_v32  ;;  %v469_v43 = vld [vmem:[#allocation2 + $0x70] sm:$0xff] }
 0x111   : > { %vm475_vm6 = vcmp.gt.f32.partialorder %v460_v0, 0.0  ;;  %v490_v11 = vmul.f32 0.2, %v460_v0  ;;  %v1200_v18 = vsel %vm474_vm7, %v459_v1, %v489_v14  ;;  %532 = vadd.xlane.f32.xlu0 %v516_v13  ;;  %v521_v30 = vmul.f32 %v1208_v24, %v1208_v24  ;;  %v468_v35 = vld [vmem:[#allocation2 + $0x68] sm:$0xff] }
 0x112   : > { %v519_v22 = vmul.f32 %v1200_v18, %v1200_v18  ;;  %v1206_v23 = vsel %vm477_vm8, %v462_v8, %v492_v16  ;;  %v1222_v39 = vsel %vm481_vm12, %v466_v27, %v496_v33  ;;  %v1224_v40 = vsel %vm480_vm13, %v465_v28, %v495_v34 }
 0x113   : > { %v1198_v15 = vsel %vm475_vm6, %v460_v0, %v490_v11  ;;  %v522_v29 = vmul.f32 %v1206_v23, %v1206_v23  ;;  %v498_v41 = vmul.f32 0.2, %v468_v35  ;;  %v497_v42 = vmul.f32 0.2, %v467_v36 }
 0x114   : > { %v520_v21 = vmul.f32 %v1198_v15, %v1198_v15  ;;  %vm483_vm14 = vcmp.gt.f32.partialorder %v468_v35, 0.0  ;;  %vm482_vm15 = vcmp.gt.f32.partialorder %v467_v36, 0.0  ;;  %v526_v44 = vmul.f32 %v1222_v39, %v1222_v39 }
 0x115   : > { %538 = vadd.xlane.f32.xlu0 %v519_v22  ;;  %v525_v45 = vmul.f32 %v1224_v40, %v1224_v40  ;;  %v1230_v46 = vsel %vm483_vm14, %v468_v35, %v498_v41  ;;  %v1232_v47 = vsel %vm482_vm15, %v467_v36, %v497_v42  ;;  %v499_v48 = vmul.f32 0.2, %v469_v43 }
 0x116   : > { %540 = vadd.xlane.f32.xlu1 %v520_v21  ;;  %vm484_vm0 = vcmp.gt.f32.partialorder %v469_v43, 0.0  ;;  %v528_v49 = vmul.f32 %v1230_v46, %v1230_v46  ;;  %v527_v50 = vmul.f32 %v1232_v47, %v1232_v47 }
 0x117   : > { %v1238_v51 = vsel %vm484_vm0, %v469_v43, %v499_v48 }
 0x118   : > { %v529_v52 = vmul.f32 %v1238_v51, %v1238_v51 }
 0x119   : > { %542 = vadd.xlane.f32.xlu0 %v521_v30 }
 0x11a   : > { %544 = vadd.xlane.f32.xlu1 %v522_v29 }
 0x11d   : > { %546 = vadd.xlane.f32.xlu0 %v523_v38 }
 0x11e   : > { %548 = vadd.xlane.f32.xlu1 %v524_v37 }
 0x121   : > { %550 = vadd.xlane.f32.xlu0 %v525_v45 }
 0x122   : > { %552 = vadd.xlane.f32.xlu1 %v526_v44 }
 0x125   : > { %554 = vadd.xlane.f32.xlu0 %v527_v50 }
 0x126   : > { %556 = vadd.xlane.f32.xlu1 %v528_v49 }
 0x129   : > { %558 = vadd.xlane.f32.xlu0 %v529_v52 }
 0x199   : > { %v535_v53 = vpop.xlane.xlu1 %534 }
 0x19a   : > { %v531_v54 = vpop.xlane.xlu0 %530  ;;  %975 = vrsqrt.f32 %v535_v53  ;;  %vm576_vm1 = vcmp.eq.f32.partialorder %v535_v53, inf  ;;  %vm578_vm2 = vcmp.eq.f32.partialorder %v535_v53, 0.0  ;;  %v579_v62 = vand.u32 2147483648, %v535_v53 }
 0x19b   : > { %977 = vrsqrt.f32 %v531_v54  ;;  %vm562_vm3 = vcmp.eq.f32.partialorder %v531_v54, inf  ;;  %vm564_vm4 = vcmp.eq.f32.partialorder %v531_v54, 0.0  ;;  %v565_v4 = vand.u32 2147483648, %v531_v54 }
 0x19d   : > { %v537_v55 = vpop.xlane.xlu1 %536 }
 0x19e   : > { %v533_v56 = vpop.xlane.xlu0 %532  ;;  %979 = vrsqrt.f32 %v537_v55  ;;  %vm583_vm5 = vcmp.eq.f32.partialorder %v537_v55, inf  ;;  %vm585_vm6 = vcmp.eq.f32.partialorder %v537_v55, 0.0  ;;  %v586_v6 = vand.u32 2147483648, %v537_v55 }
 0x19f   : > { %981 = vrsqrt.f32 %v533_v56  ;;  %vm569_vm7 = vcmp.eq.f32.partialorder %v533_v56, inf  ;;  %vm571_vm8 = vcmp.eq.f32.partialorder %v533_v56, 0.0  ;;  %v572_v17 = vand.u32 2147483648, %v533_v56 }
 0x1a2   : > { %v1244_v58 = vpop.xlane.xlu0 %538 }
 0x1a3   : > { %v1242_v57 = vpop.xlane.xlu1 %540  ;;  %vm590_vm11 = vcmp.eq.f32.partialorder %v1244_v58, inf  ;;  %vm592_vm12 = vcmp.eq.f32.partialorder %v1244_v58, 0.0  ;;  %v593_v42 = vand.u32 2147483648, %v1244_v58 }
 0x1a4   : > { %983 = vrsqrt.f32 %v1242_v57  ;;  %v976_v59 = vpop.eup %975  ;;  %vm597_vm9 = vcmp.eq.f32.partialorder %v1242_v57, inf  ;;  %vm599_vm10 = vcmp.eq.f32.partialorder %v1242_v57, 0.0  ;;  %v600_v26 = vand.u32 2147483648, %v1242_v57 }
 0x1a5   : > { %985 = vrsqrt.f32 %v1244_v58  ;;  %v978_v60 = vpop.eup %977  ;;  %v575_v61 = vmul.f32 %v976_v59, %v535_v53 }
 0x1a6   : > { %v1250_v0 = vpop.xlane.xlu0 %542  ;;  %v561_v1 = vmul.f32 %v978_v60, %v531_v54 }
 0x1a7   : > { %v1248_v63 = vpop.xlane.xlu1 %544  ;;  %v577_v5 = vsel %vm576_vm1, %v535_v53, %v575_v61  ;;  %vm604_vm15 = vcmp.eq.f32.partialorder %v1250_v0, inf  ;;  %vm606_vm0 = vcmp.eq.f32.partialorder %v1250_v0, 0.0  ;;  %v607_v60 = vand.u32 2147483648, %v1250_v0 }
 0x1a8   : > { %987 = vrsqrt.f32 %v1248_v63  ;;  %v980_v8 = vpop.eup %979  ;;  %v580_v9 = vsel %vm578_vm2, %v579_v62, %v577_v5  ;;  %v563_v11 = vsel %vm562_vm3, %v531_v54, %v561_v1  ;;  %vm611_vm13 = vcmp.eq.f32.partialorder %v1248_v63, inf }
 0x1a9   : > { %989 = vrsqrt.f32 %v1250_v0  ;;  %v982_v12 = vpop.eup %981  ;;  %v667_v13 = vadd.f32 1e-08, %v580_v9  ;;  %v566_v14 = vsel %vm564_vm4, %v565_v4, %v563_v11  ;;  %v582_v16 = vmul.f32 %v980_v8, %v537_v55 }
 0x1aa   : > { %v1258_v20 = vpop.xlane.xlu0 %546  ;;  %v665_v21 = vadd.f32 1e-08, %v566_v14  ;;  %v568_v22 = vmul.f32 %v982_v12, %v533_v56  ;;  %vm613_vm14 = vcmp.eq.f32.partialorder %v1248_v63, 0.0  ;;  %v614_v49 = vand.u32 2147483648, %v1248_v63 }
 0x1ab   : > { %v1256_v19 = vpop.xlane.xlu1 %548  ;;  %v584_v25 = vsel %vm583_vm5, %v537_v55, %v582_v16  ;;  %vm618_vm3 = vcmp.eq.f32.partialorder %v1258_v20, inf  ;;  %vm620_vm4 = vcmp.eq.f32.partialorder %v1258_v20, 0.0 }
 0x1ac   : > { %991 = vrsqrt.f32 %v1256_v19  ;;  %v587_v28 = vsel %vm585_vm6, %v586_v6, %v584_v25  ;;  %v570_v29 = vsel %vm569_vm7, %v533_v56, %v568_v22  ;;  %vm625_vm1 = vcmp.eq.f32.partialorder %v1256_v19, inf }
 0x1ad   : > { %993 = vrcp.f32 %v667_v13  ;;  %v668_v33 = vadd.f32 1e-08, %v587_v28  ;;  %v573_v34 = vsel %vm571_vm8, %v572_v17, %v570_v29  ;;  %vm627_vm2 = vcmp.eq.f32.partialorder %v1256_v19, 0.0 }
 0x1ae   : > { %v984_v27 = vpop.eup %983  ;;  %995 = vrcp.f32 %v665_v21  ;;  %v1273_v37 = vpop.xlane.xlu0 %550  ;;  %v666_v38 = vadd.f32 1e-08, %v573_v34  ;;  %v628_v13 = vand.u32 2147483648, %v1256_v19  ;;  %v621_v28 = vand.u32 2147483648, %v1258_v20 }
 0x1af   : > { %v986_v30 = vpop.eup %985  ;;  %v596_v35 = vmul.f32 %v984_v27, %v1242_v57  ;;  %997 = vrsqrt.f32 %v1258_v20  ;;  %v1271_v36 = vpop.xlane.xlu1 %552  ;;  %vm632_vm7 = vcmp.eq.f32.partialorder %v1273_v37, inf  ;;  %vm634_vm8 = vcmp.eq.f32.partialorder %v1273_v37, 0.0 }
 0x1b0   : > { %v589_v41 = vmul.f32 %v986_v30, %v1244_v58  ;;  %999 = vrcp.f32 %v668_v33  ;;  %vm639_vm5 = vcmp.eq.f32.partialorder %v1271_v36, inf  ;;  %vm641_vm6 = vcmp.eq.f32.partialorder %v1271_v36, 0.0 }
 0x1b1   : > { %v598_v43 = vsel %vm597_vm9, %v1242_v57, %v596_v35  ;;  %1001 = vrcp.f32 %v666_v38 }
 0x1b2   : > { %v988_v44 = vpop.eup %987  ;;  %v601_v45 = vsel %vm599_vm10, %v600_v26, %v598_v43  ;;  %v591_v48 = vsel %vm590_vm11, %v1244_v58, %v589_v41  ;;  %1003 = vrsqrt.f32 %v1271_v36  ;;  %v1291_v55 = vpop.xlane.xlu0 %554  ;;  %v642_v43 = vand.u32 2147483648, %v1271_v36 }
 0x1b3   : > { %v990_v50 = vpop.eup %989  ;;  %v670_v52 = vadd.f32 1e-08, %v601_v45  ;;  %v594_v53 = vsel %vm592_vm12, %v593_v42, %v591_v48  ;;  %v610_v54 = vmul.f32 %v988_v44, %v1248_v63  ;;  %1005 = vrsqrt.f32 %v1273_v37  ;;  %v1296_v57 = vpop.xlane.xlu1 %556 }
 0x1b4   : > { %v669_v56 = vadd.f32 1e-08, %v594_v53  ;;  %v603_v59 = vmul.f32 %v990_v50, %v1250_v0  ;;  %vm653_vm9 = vcmp.eq.f32.partialorder %v1296_v57, inf  ;;  %vm655_vm10 = vcmp.eq.f32.partialorder %v1296_v57, 0.0 }
 0x1b5   : > { %1007 = vrcp.f32 %v670_v52  ;;  %v612_v58 = vsel %vm611_vm13, %v1248_v63, %v610_v54  ;;  %vm646_vm11 = vcmp.eq.f32.partialorder %v1291_v55, inf  ;;  %vm648_vm12 = vcmp.eq.f32.partialorder %v1291_v55, 0.0 }
 0x1b6   : > { %v992_v61 = vpop.eup %991  ;;  %1009 = vrcp.f32 %v669_v56  ;;  %v615_v62 = vsel %vm613_vm14, %v614_v49, %v612_v58  ;;  %v605_v1 = vsel %vm604_vm15, %v1250_v0, %v603_v59  ;;  %v1313_v16 = vpop.xlane.xlu0 %558  ;;  %v635_v49 = vand.u32 2147483648, %v1273_v37 }
 0x1b7   : > { %v994_v4 = vpop.eup %993  ;;  %v672_v5 = vadd.f32 1e-08, %v615_v62  ;;  %v608_v6 = vsel %vm606_vm0, %v607_v60, %v605_v1  ;;  %v624_v8 = vmul.f32 %v992_v61, %v1256_v19  ;;  %1011 = vrsqrt.f32 %v1296_v57 }
 0x1b8   : > { %v996_v9 = vpop.eup %995  ;;  %v697_v11 = vmul.f32 5.656854, %v994_v4  ;;  %v671_v12 = vadd.f32 1e-08, %v608_v6  ;;  %v656_v62 = vand.u32 2147483648, %v1296_v57  ;;  %vm660_vm13 = vcmp.eq.f32.partialorder %v1313_v16, inf }
 0x1b9   : > { %v998_v63 = vpop.eup %997  ;;  %v695_v14 = vmul.f32 5.656854, %v996_v9  ;;  %1013 = vrcp.f32 %v672_v5  ;;  %v626_v0 = vsel %vm625_vm1, %v1256_v19, %v624_v8  ;;  %vm662_vm14 = vcmp.eq.f32.partialorder %v1313_v16, 0.0 }
 0x1ba   : > { %v712_v17 = vmul.f32 %v697_v11, %v1182_v2  ;;  %1015 = vrcp.f32 %v671_v12  ;;  %v629_v21 = vsel %vm627_vm2, %v628_v13, %v626_v0  ;;  %v617_v22 = vmul.f32 %v998_v63, %v1258_v20  ;;  %v1000_v25 = vpop.eup %999 }
 0x1bb   : > { %v710_v26 = vmul.f32 %v695_v14, %v1184_v3  ;;  %v674_v27 = vadd.f32 1e-08, %v629_v21  ;;  %1017 = vrsqrt.f32 %v1291_v55  ;;  %v1002_v19 = vpop.eup %1001  ;;  %v698_v29 = vmul.f32 5.656854, %v1000_v25 }
 0x1bc   : > { %727 = vst [vmem:[%s1167_s6 + $0x10] sm:$0xff] %v712_v17  ;;  %v619_v30 = vsel %vm618_vm3, %v1258_v20, %v617_v22  ;;  %1019 = vrsqrt.f32 %v1313_v16  ;;  %v1004_v2 = vpop.eup %1003  ;;  %v696_v33 = vmul.f32 5.656854, %v1002_v19  ;;  %v649_v13 = vand.u32 2147483648, %v1291_v55 }
 0x1bd   : > { %725 = vst [vmem:[%s1167_s6] sm:$0xff] %v710_v26  ;;  %1021 = vrcp.f32 %v674_v27  ;;  %v622_v3 = vsel %vm620_vm4, %v621_v28, %v619_v30  ;;  %v1006_v34 = vpop.eup %1005  ;;  %v713_v35 = vmul.f32 %v698_v29, %v1190_v7  ;;  %v638_v41 = vmul.f32 %v1004_v2, %v1271_v36 }
 0x1be   : > { %v673_v38 = vadd.f32 1e-08, %v622_v3  ;;  %v711_v42 = vmul.f32 %v696_v33, %v1192_v10  ;;  %v631_v44 = vmul.f32 %v1006_v34, %v1273_v37  ;;  %v663_v0 = vand.u32 2147483648, %v1313_v16 }
 0x1bf   : > { %v1008_v20 = vpop.eup %1007  ;;  %728 = vst [vmem:[%s1167_s6 + $0x18] sm:$0xff] %v713_v35  ;;  %v640_v7 = vsel %vm639_vm5, %v1271_v36, %v638_v41 }
 0x1c0   : > { %v1010_v45 = vpop.eup %1009  ;;  %v700_v48 = vmul.f32 5.656854, %v1008_v20  ;;  %1023 = vrcp.f32 %v673_v38  ;;  %726 = vst [vmem:[%s1167_s6 + $0x8] sm:$0xff] %v711_v42  ;;  %v643_v53 = vsel %vm641_vm6, %v642_v43, %v640_v7  ;;  %v633_v10 = vsel %vm632_vm7, %v1273_v37, %v631_v44 }
 0x1c1   : > { %v1012_v50 = vpop.eup %1011  ;;  %v699_v52 = vmul.f32 5.656854, %v1010_v45  ;;  %v676_v56 = vadd.f32 1e-08, %v643_v53  ;;  %v636_v59 = vsel %vm634_vm8, %v635_v49, %v633_v10 }
 0x1c2   : > { %v715_v54 = vmul.f32 %v700_v48, %v1198_v15  ;;  %v652_v58 = vmul.f32 %v1012_v50, %v1296_v57  ;;  %v675_v61 = vadd.f32 1e-08, %v636_v59 }
 0x1c3   : > { %v1014_v60 = vpop.eup %1013  ;;  %v714_v36 = vmul.f32 %v699_v52, %v1200_v18  ;;  %1025 = vrcp.f32 %v676_v56 }
 0x1c4   : > { %v1016_v1 = vpop.eup %1015  ;;  %730 = vst [vmem:[%s1167_s6 + $0x28] sm:$0xff] %v715_v54  ;;  %v702_v4 = vmul.f32 5.656854, %v1014_v60  ;;  %v654_v37 = vsel %vm653_vm9, %v1296_v57, %v652_v58  ;;  %1027 = vrcp.f32 %v675_v61 }
 0x1c5   : > { %v1018_v15 = vpop.eup %1017  ;;  %729 = vst [vmem:[%s1167_s6 + $0x20] sm:$0xff] %v714_v36  ;;  %v701_v5 = vmul.f32 5.656854, %v1016_v1  ;;  %v657_v6 = vsel %vm655_vm10, %v656_v62, %v654_v37 }
 0x1c6   : > { %v1020_v18 = vpop.eup %1019  ;;  %v717_v8 = vmul.f32 %v702_v4, %v1206_v23  ;;  %v678_v9 = vadd.f32 1e-08, %v657_v6  ;;  %v645_v11 = vmul.f32 %v1018_v15, %v1291_v55 }
 0x1c7   : > { %v1022_v12 = vpop.eup %1021  ;;  %v716_v57 = vmul.f32 %v701_v5, %v1208_v24  ;;  %v659_v63 = vmul.f32 %v1020_v18, %v1313_v16 }
 0x1c8   : > { %732 = vst [vmem:[%s1167_s6 + $0x38] sm:$0xff] %v717_v8  ;;  %v704_v14 = vmul.f32 5.656854, %v1022_v12  ;;  %1029 = vrcp.f32 %v678_v9  ;;  %v647_v23 = vsel %vm646_vm11, %v1291_v55, %v645_v11 }
 0x1c9   : > { %731 = vst [vmem:[%s1167_s6 + $0x30] sm:$0xff] %v716_v57  ;;  %v650_v17 = vsel %vm648_vm12, %v649_v13, %v647_v23  ;;  %v661_v21 = vsel %vm660_vm13, %v1313_v16, %v659_v63 }
 0x1ca   : > { %v1024_v24 = vpop.eup %1023  ;;  %v719_v22 = vmul.f32 %v704_v14, %v1214_v31  ;;  %v677_v25 = vadd.f32 1e-08, %v650_v17  ;;  %v664_v26 = vsel %vm662_vm14, %v663_v0, %v661_v21 }
 0x1cb   : > { %v703_v27 = vmul.f32 5.656854, %v1024_v24  ;;  %v679_v28 = vadd.f32 1e-08, %v664_v26 }
 0x1cc   : > { %734 = vst [vmem:[%s1167_s6 + $0x48] sm:$0xff] %v719_v22  ;;  %1031 = vrcp.f32 %v677_v25 }
 0x1cd   : > { %v718_v55 = vmul.f32 %v703_v27, %v1216_v32  ;;  %1033 = vrcp.f32 %v679_v28  ;;  %v1026_v19 = vpop.eup %1025 }
 0x1ce   : > { %v1028_v29 = vpop.eup %1027  ;;  %v706_v30 = vmul.f32 5.656854, %v1026_v19 }
 0x1cf   : > { %733 = vst [vmem:[%s1167_s6 + $0x40] sm:$0xff] %v718_v55  ;;  %v705_v16 = vmul.f32 5.656854, %v1028_v29 }
 0x1d0   : > { %v721_v31 = vmul.f32 %v706_v30, %v1222_v39 }
 0x1d1   : > { %v720_v33 = vmul.f32 %v705_v16, %v1224_v40 }
 0x1d2   : > { %v1030_v2 = vpop.eup %1029  ;;  %736 = vst [vmem:[%s1167_s6 + $0x58] sm:$0xff] %v721_v31 }
 0x1d3   : > { %v708_v3 = vmul.f32 5.656854, %v1030_v2  ;;  %735 = vst [vmem:[%s1167_s6 + $0x50] sm:$0xff] %v720_v33 }
 0x1d5   : > { %v723_v34 = vmul.f32 %v708_v3, %v1230_v46 }
 0x1d6   : > { %v1032_v32 = vpop.eup %1031 }
 0x1d7   : > { %v1034_v35 = vpop.eup %1033  ;;  %738 = vst [vmem:[%s1167_s6 + $0x68] sm:$0xff] %v723_v34  ;;  %v707_v38 = vmul.f32 5.656854, %v1032_v32 }
 0x1d8   : > { %v709_v41 = vmul.f32 5.656854, %v1034_v35 }
 0x1d9   : > { %v722_v20 = vmul.f32 %v707_v38, %v1232_v47 }
 0x1da   : > { %v724_v42 = vmul.f32 %v709_v41, %v1238_v51 }
 0x1db   : > { %737 = vst [vmem:[%s1167_s6 + $0x60] sm:$0xff] %v722_v20 }
 0x1dc   : > { %739 = vst [vmem:[%s1167_s6 + $0x70] sm:$0xff] %v724_v42 }
 0x1dd PF: > { %s12_s15 = sadd.s32 1, %s1089_s15   ;;  %s1400_s9 = smov %s1077_s12 }
 0x1de   : > { %p9_p11 = scmp.ge.s32.totalorder %s12_s15, 26   ;;  %s1401_s10 = smov %s1081_s13 }
 0x1df   : > { %s1402_s11 = smov %s1085_s14  ;;  %s1403_s12 = smov %s1407_s16 }
 0x1e0   : > { %s1404_s13 = smov %s1411_s17  ;;  %s1405_s14 = smov %s1415_s18 }
 0x1e1   :  { %11 = sbr.rel (!%p9_p11) target bundleno = 4 (0x4), region = 70 }

</bundles_post_ra>
